<compile_context>
chip_gen: v6e
topology: v6e:2x2x1
jax: 0.10.0
libtpu: 0.0.40
codegen_flags: <defaults>
</compile_context>

<pallas_src>
import functools

import jax
import jax.numpy as jnp
from jax import lax
from jax.experimental import pallas as pl
from jax.experimental.pallas import tpu as pltpu


def _round_up(x, m):
    return (x + m - 1) // m * m


def _vmem_limit_bytes():
    # Generation-aware scoped-VMEM budget (v7x has only 64 MiB per TensorCore).
    try:
        cap = int(pltpu.get_tpu_info().vmem_capacity_bytes)
    except Exception:
        cap = 64 << 20
    return max(32 << 20, min(cap * 3 // 4, 96 << 20))


_VMEM_LIMIT = _vmem_limit_bytes()


# --------------------------------------------------------------------------
# Pallas kernels
# --------------------------------------------------------------------------
def _mm_kernel(x_ref, w_ref, shift_ref, o_ref, acc_ref, *, relu):
    """K-tiled matmul: acc += x@w (bf16 -> f32); epilogue on last K step."""
    k = pl.program_id(1)

    @pl.when(k == 0)
    def _():
        acc_ref[...] = jnp.zeros_like(acc_ref)

    acc_ref[...] += jnp.dot(x_ref[...], w_ref[...],
                            preferred_element_type=jnp.float32)

    @pl.when(k == pl.num_programs(1) - 1)
    def _():
        y = acc_ref[...] + shift_ref[...]
        if relu:
            y = jnp.maximum(y, 0.0)
        o_ref[...] = y.astype(o_ref.dtype)


def _dconv_kernel(*refs, offsets, tmo, single_tile, relu, has_res):
    """Direct stride-1 conv: sum of per-tap matmuls over contiguous windows.

    x_ref    : (1, Lp, Cin)      bf16 flattened padded image (full row width)
    w_ref    : (taps, Cin, Cout) bf16 (BN scale pre-folded)
    shift_ref: (1, Cout)         f32
    res_ref  : (1, tmo, Cout)    f32 (optional residual, pre-padded)
    o_ref    : (1, tmo, Cout)    f32
    """
    if has_res:
        x_ref, w_ref, shift_ref, res_ref, o_ref = refs
    else:
        x_ref, w_ref, shift_ref, o_ref = refs

    base = 0 if single_tile else pl.program_id(1) * tmo
    acc = None
    for t, d in enumerate(offsets):
        if single_tile:
            v = x_ref[0, d:d + tmo, :]                 # static contiguous slice
        else:
            v = x_ref[0, pl.ds(base + d, tmo), :]
        p = jnp.dot(v, w_ref[t], preferred_element_type=jnp.float32)
        acc = p if acc is None else acc + p

    y = acc + shift_ref[...]
    if has_res:
        y = y + res_ref[0]
    if relu:
        y = jnp.maximum(y, 0.0)
    o_ref[0] = y.astype(o_ref.dtype)


def _maxpool_kernel(ee_ref, eo_ref, oe_ref, oo_ref, o_ref, *, Ho, Wo):
    """3x3/s2 max-pool from 4 stride-2 phase views (all slices contiguous)."""
    m = ee_ref[0, 0:Ho, 0:Wo, :]
    m = jnp.maximum(m, ee_ref[0, 0:Ho, 1:Wo + 1, :])
    m = jnp.maximum(m, ee_ref[0, 1:Ho + 1, 0:Wo, :])
    m = jnp.maximum(m, ee_ref[0, 1:Ho + 1, 1:Wo + 1, :])
    m = jnp.maximum(m, eo_ref[0, 0:Ho, 0:Wo, :])
    m = jnp.maximum(m, eo_ref[0, 1:Ho + 1, 0:Wo, :])
    m = jnp.maximum(m, oe_ref[0, 0:Ho, 0:Wo, :])
    m = jnp.maximum(m, oe_ref[0, 0:Ho, 1:Wo + 1, :])
    m = jnp.maximum(m, oo_ref[0, 0:Ho, 0:Wo, :])
    o_ref[0] = m


def _avgpool_kernel(x_ref, o_ref, *, inv_hw):
    # x_ref: (N, HW, C) -> mean over spatial axis 1 (no HBM transpose needed).
    o_ref[...] = (jnp.sum(x_ref[...], axis=1) * inv_hw).astype(o_ref.dtype)


# --------------------------------------------------------------------------
# Pallas wrappers
# --------------------------------------------------------------------------
def fused_matmul(x, w, shift, relu=False):
    """out = act((x @ w) + shift); bf16 operands, f32 accumulate, K-tiled."""
    M, K = x.shape
    Nc = w.shape[1]

    # M tile: big (<=512) but split so the parallel axis has >=2 programs.
    tm = min(512, max(8, _round_up((M + 1) // 2, 8)))
    M_pad = _round_up(M, tm)

    # K tile: single step for small K, 768-wide reduction steps for large K.
    if K > 1536:
        tk = 768
        K_pad = _round_up(K, tk)
    else:
        tk = K
        K_pad = K
    nk = K_pad // tk

    xb = x.astype(jnp.bfloat16)
    wb = w.astype(jnp.bfloat16)
    if M_pad != M or K_pad != K:
        xb = jnp.pad(xb, ((0, M_pad - M), (0, K_pad - K)))
    if K_pad != K:
        wb = jnp.pad(wb, ((0, K_pad - K), (0, 0)))
    shift2 = shift.reshape(1, Nc).astype(jnp.float32)

    flops = 2 * M_pad * K_pad * Nc
    bytes_acc = M_pad * K_pad * 2 + K_pad * Nc * 2 + M_pad * Nc * 4 + Nc * 4

    out = pl.pallas_call(
        functools.partial(_mm_kernel, relu=relu),
        grid=(M_pad // tm, nk),
        in_specs=[
            pl.BlockSpec((tm, tk), lambda i, k: (i, k)),
            pl.BlockSpec((tk, Nc), lambda i, k: (k, 0)),
            pl.BlockSpec((1, Nc), lambda i, k: (0, 0)),
        ],
        out_specs=pl.BlockSpec((tm, Nc), lambda i, k: (i, 0)),
        out_shape=jax.ShapeDtypeStruct((M_pad, Nc), jnp.float32),
        scratch_shapes=[pltpu.VMEM((tm, Nc), jnp.float32)],
        compiler_params=pltpu.CompilerParams(
            dimension_semantics=("parallel", "arbitrary"),
            vmem_limit_bytes=_VMEM_LIMIT),
        cost_estimate=pl.CostEstimate(
            flops=flops, transcendentals=0, bytes_accessed=bytes_acc),
    )(xb, wb, shift2)
    return out[:M]


def conv2d_im2col(x, w, scale, shift, stride, padding, relu):
    """Strided conv: bf16 im2col (JAX glue) + K-tiled fused Pallas matmul."""
    N, H, W, Cin = x.shape
    KH, KW, _, Cout = w.shape
    Ho = (H + 2 * padding - KH) // stride + 1
    Wo = (W + 2 * padding - KW) // stride + 1
    xp = jnp.pad(x, ((0, 0), (padding, padding), (padding, padding), (0, 0)))
    xp = xp.astype(jnp.bfloat16)                      # halve im2col HBM traffic
    patches = [
        xp[:, kh:kh + (Ho - 1) * stride + 1:stride,
              kw:kw + (Wo - 1) * stride + 1:stride, :]
        for kh in range(KH) for kw in range(KW)
    ]
    pat = jnp.concatenate(patches, axis=-1)           # (N, Ho, Wo, KH*KW*Cin)
    x2 = pat.reshape(N * Ho * Wo, KH * KW * Cin)
    # Fold BN scale into the weights (f32) before the bf16 cast in fused_matmul.
    w2 = (w.astype(jnp.float32) * scale.reshape(1, 1, 1, Cout)
          ).reshape(KH * KW * Cin, Cout)
    y = fused_matmul(x2, w2, shift, relu=relu)
    return y.reshape(N, Ho, Wo, Cout)


def conv2d_s1_direct(x, w, scale, shift, relu, residual=None, padding=1):
    """Stride-1 conv fused in one Pallas kernel (no im2col materialization)."""
    N, H, W, Cin = x.shape
    KH, KW, _, Cout = w.shape
    Hp, Wp = H + 2 * padding, W + 2 * padding
    Ho, Wo = Hp - KH + 1, Wp - KW + 1

    # Full-row-width flattening: output computed at width Wp (junk columns are
    # sliced off afterwards) so every tap is a contiguous flat window.
    Mo = Ho * Wp
    tmo = min(256, _round_up(Mo, 8))
    Mo_pad = _round_up(Mo, tmo)
    mo_tiles = Mo_pad // tmo
    d_max = (KH - 1) * Wp + (KW - 1)
    Lp = Mo_pad + d_max

    xf = jnp.pad(x.astype(jnp.bfloat16),
                 ((0, 0), (padding, padding), (padding, padding), (0, 0)))
    xf = xf.reshape(N, Hp * Wp, Cin)
    if Lp > Hp * Wp:
        xf = jnp.pad(xf, ((0, 0), (0, Lp - Hp * Wp), (0, 0)))

    w_eff = (w.astype(jnp.float32) * scale.reshape(1, 1, 1, Cout)
             ).reshape(KH * KW, Cin, Cout).astype(jnp.bfloat16)
    shift2 = shift.reshape(1, Cout).astype(jnp.float32)
    offsets = tuple(kh * Wp + kw for kh in range(KH) for kw in range(KW))

    args = [xf, w_eff, shift2]
    in_specs = [
        pl.BlockSpec((1, Lp, Cin), lambda n, j: (n, 0, 0)),
        pl.BlockSpec((KH * KW, Cin, Cout), lambda n, j: (0, 0, 0)),
        pl.BlockSpec((1, Cout), lambda n, j: (0, 0)),
    ]
    has_res = residual is not None
    res_bytes = 0
    if has_res:
        r = jnp.pad(residual.astype(jnp.float32),
                    ((0, 0), (0, 0), (0, Wp - Wo), (0, 0)))
        r = r.reshape(N, Mo, Cout)
        if Mo_pad > Mo:
            r = jnp.pad(r, ((0, 0), (0, Mo_pad - Mo), (0, 0)))
        args.append(r)
        in_specs.append(pl.BlockSpec((1, tmo, Cout), lambda n, j: (n, j, 0)))
        res_bytes = N * Mo_pad * Cout * 4

    kern = functools.partial(_dconv_kernel, offsets=offsets, tmo=tmo,
                             single_tile=(mo_tiles == 1), relu=relu,
                             has_res=has_res)
    flops = 2 * N * Mo_pad * KH * KW * Cin * Cout
    bytes_acc = (N * Lp * Cin * 2 + KH * KW * Cin * Cout * 2
                 + N * Mo_pad * Cout * 4 + res_bytes)

    out = pl.pallas_call(
        kern,
        grid=(N, mo_tiles),
        in_specs=in_specs,
        out_specs=pl.BlockSpec((1, tmo, Cout), lambda n, j: (n, j, 0)),
        out_shape=jax.ShapeDtypeStruct((N, Mo_pad, Cout), jnp.float32),
        compiler_params=pltpu.CompilerParams(
            dimension_semantics=("parallel", "parallel"),
            vmem_limit_bytes=_VMEM_LIMIT),
        cost_estimate=pl.CostEstimate(
            flops=flops, transcendentals=0, bytes_accessed=bytes_acc),
    )(*args)

    y = out[:, :Mo, :].reshape(N, Ho, Wp, Cout)[:, :, :Wo, :]
    return y


def maxpool_3x3_s2_p1(x):
    """MaxPool(3,2,1) via 4 stride-2 phase views + one Pallas max kernel."""
    N, H, W, C = x.shape
    Ho = (H + 2 - 3) // 2 + 1
    Wo = (W + 2 - 3) // 2 + 1
    xp = jnp.pad(x, ((0, 0), (1, 2), (1, 2), (0, 0)),
                 constant_values=-jnp.inf)

    def phase(a, b):
        return lax.slice(xp, (0, a, b, 0),
                         (N, a + 2 * Ho + 1, b + 2 * Wo + 1, C),
                         (1, 2, 2, 1))                 # (N, Ho+1, Wo+1, C)

    ee, eo, oe, oo = phase(0, 0), phase(0, 1), phase(1, 0), phase(1, 1)

    out = pl.pallas_call(
        functools.partial(_maxpool_kernel, Ho=Ho, Wo=Wo),
        grid=(N,),
        in_specs=[pl.BlockSpec((1, Ho + 1, Wo + 1, C), lambda n: (n, 0, 0, 0))
                  for _ in range(4)],
        out_specs=pl.BlockSpec((1, Ho, Wo, C), lambda n: (n, 0, 0, 0)),
        out_shape=jax.ShapeDtypeStruct((N, Ho, Wo, C), jnp.float32),
        compiler_params=pltpu.CompilerParams(
            dimension_semantics=("parallel",),
            vmem_limit_bytes=_VMEM_LIMIT),
    )(ee, eo, oe, oo)
    return out


def global_avgpool(x):
    N, H, W, C = x.shape
    hw = H * W
    xr = x.reshape(N, hw, C)                            # free reshape, no transpose
    out = pl.pallas_call(
        functools.partial(_avgpool_kernel, inv_hw=1.0 / hw),
        grid=(1,),
        in_specs=[pl.BlockSpec((N, hw, C), lambda i: (0, 0, 0))],
        out_specs=pl.BlockSpec((N, C), lambda i: (0, 0)),
        out_shape=jax.ShapeDtypeStruct((N, C), jnp.float32),
        compiler_params=pltpu.CompilerParams(vmem_limit_bytes=_VMEM_LIMIT),
    )(xr)
    return out


# --------------------------------------------------------------------------
# Parameter init (deterministic, synthetic) and model forward
# --------------------------------------------------------------------------
def _conv_w(key, kh, kw, cin, cout):
    fan_in = kh * kw * cin
    return jax.random.normal(key, (kh, kw, cin, cout), jnp.float32) * (2.0 / fan_in) ** 0.5


def _bn_affine(key, c, eps=1e-5):
    k1, k2 = jax.random.split(key)
    gamma = 1.0 + 0.1 * jax.random.normal(k1, (c,), jnp.float32)
    beta = 0.1 * jax.random.normal(k2, (c,), jnp.float32)
    running_mean = jnp.zeros((c,), jnp.float32)
    running_var = jnp.ones((c,), jnp.float32)
    scale = gamma / jnp.sqrt(running_var + eps)
    shift = beta - running_mean * scale
    return scale, shift


def init_resnet4one(key, num_blocks, num_classes=10, mnst_ver=True):
    in_ch = 1 if mnst_ver else 3
    params = {}
    key, k = jax.random.split(key)
    params["conv1_w"] = _conv_w(k, 7, 7, in_ch, 64)
    key, k = jax.random.split(key)
    params["conv1_b"] = 0.1 * jax.random.normal(k, (64,), jnp.float32)

    in_planes = 64
    layers = []
    for out_planes, nb, stride0 in zip((64, 128, 256, 512), num_blocks, (1, 2, 2, 2)):
        blocks = []
        for bi in range(nb):
            stride = stride0 if bi == 0 else 1
            blk = {"stride": stride}
            key, k = jax.random.split(key)
            blk["conv1_w"] = _conv_w(k, 3, 3, in_planes, out_planes)
            key, k = jax.random.split(key)
            blk["bn1"] = _bn_affine(k, out_planes)
            key, k = jax.random.split(key)
            blk["conv2_w"] = _conv_w(k, 3, 3, out_planes, out_planes)
            key, k = jax.random.split(key)
            blk["bn2"] = _bn_affine(k, out_planes)
            if stride != 1 or in_planes != out_planes:
                key, k = jax.random.split(key)
                blk["sc_w"] = _conv_w(k, 1, 1, in_planes, out_planes)
                key, k = jax.random.split(key)
                blk["sc_bn"] = _bn_affine(k, out_planes)
            blocks.append(blk)
            in_planes = out_planes
        layers.append(blocks)
    params["layers"] = layers

    key, k = jax.random.split(key)
    params["fc_w"] = jax.random.normal(k, (512, num_classes), jnp.float32) * (1.0 / 512) ** 0.5
    key, k = jax.random.split(key)
    params["fc_b"] = 0.1 * jax.random.normal(k, (num_classes,), jnp.float32)
    return params


def basic_block_forward(x, blk):
    s = blk["stride"]
    if s == 1:
        out1 = conv2d_s1_direct(x, blk["conv1_w"], blk["bn1"][0], blk["bn1"][1],
                                relu=True, padding=1)
    else:
        out1 = conv2d_im2col(x, blk["conv1_w"], blk["bn1"][0], blk["bn1"][1],
                             stride=s, padding=1, relu=True)
    if "sc_w" in blk:
        sc = conv2d_im2col(x, blk["sc_w"], blk["sc_bn"][0], blk["sc_bn"][1],
                           stride=s, padding=0, relu=False)
    else:
        sc = x
    # conv2 is always 3x3 stride 1 -> direct fused kernel with residual + ReLU.
    out = conv2d_s1_direct(out1, blk["conv2_w"], blk["bn2"][0], blk["bn2"][1],
                           relu=True, residual=sc, padding=1)
    return out


def resnet4one_forward(x_nchw, params):
    # Input is NCHW (PyTorch); converted once to NHWC for the kernels.
    x = jnp.transpose(x_nchw, (0, 2, 3, 1)).astype(jnp.float32)
    ones64 = jnp.ones((64,), jnp.float32)
    out = conv2d_im2col(x, params["conv1_w"], ones64, params["conv1_b"],
                        stride=2, padding=3, relu=True)       # conv1 + ReLU
    out = maxpool_3x3_s2_p1(out)                              # maxpool1
    for blocks in params["layers"]:                           # layer1..layer4
        for blk in blocks:
            out = basic_block_forward(out, blk)
    pooled = global_avgpool(out)                              # (N, 512)
    logits = fused_matmul(pooled, params["fc_w"], params["fc_b"], relu=False)
    return logits


if __name__ == "__main__":
    key = jax.random.PRNGKey(0)
    kx, kp = jax.random.split(key)
    # MNIST-style single-channel input, small spatial size.
    x = jax.random.normal(kx, (2, 1, 32, 32), jnp.float32)
    params = init_resnet4one(kp, num_blocks=(1, 1, 1, 1), num_classes=10, mnst_ver=True)
    logits = resnet4one_forward(x, params)
    logits = jax.block_until_ready(logits)
    assert logits.shape == (2, 10), logits.shape
    assert bool(jnp.all(jnp.isfinite(logits)))
    print("KERNEL_OK")
</pallas_src>

<mosaic_0001>
module attributes {stable_mosaic.version = 11 : i64} {
  func.func @_mm_kernel(%arg0: i32, %arg1: i32, %arg2: memref<256x49xbf16, #tpu.memory_space<vmem>>, %arg3: memref<49x64xbf16, #tpu.memory_space<vmem>>, %arg4: memref<1x64xf32, #tpu.memory_space<vmem>>, %arg5: memref<256x64xf32, #tpu.memory_space<vmem>>, %arg6: memref<256x64xf32, #tpu.memory_space<vmem>>) attributes {dimension_semantics = [#tpu.dimension_semantics<parallel>, #tpu.dimension_semantics<arbitrary>], iteration_bounds = array<i64: 2, 1>, scalar_prefetch = 0 : i64, scratch_operands = 1 : i64, tpu.core_type = #tpu.core_type<tc>, window_params = [{transform_indices = @transform_0, window_bounds = array<i64: 256, 49>}, {transform_indices = @transform_1, window_bounds = array<i64: 49, 64>}, {pipeline_mode = #tpu.pipeline_mode<synchronous>, transform_indices = @transform_2, window_bounds = array<i64: 1, 64>}, {transform_indices = @transform_3, window_bounds = array<i64: 256, 64>}]} {
    %c0_i32 = arith.constant 0 : i32
    %0 = arith.cmpi eq, %arg1, %c0_i32 : i32
    %1 = arith.extui %0 : i1 to i32
    %c0_i32_0 = arith.constant 0 : i32
    %2 = arith.cmpi ne, %1, %c0_i32_0 : i32
    scf.if %2 {
      %cst_10 = arith.constant 0.000000e+00 : f32
      %12 = vector.broadcast %cst_10 : f32 to vector<256x64xf32>
      %c0_11 = arith.constant 0 : index
      %c0_12 = arith.constant 0 : index
      %13 = vector.load %arg6[%c0_11, %c0_12] : memref<256x64xf32, #tpu.memory_space<vmem>>, vector<256x64xf32>
      tpu.vector_store %arg6[%c0_11, %c0_12], %12 {strides = array<i32>} : memref<256x64xf32, #tpu.memory_space<vmem>>, vector<256x64xf32>,
    } else {
    }
    %c0 = arith.constant 0 : index
    %c0_1 = arith.constant 0 : index
    %3 = vector.load %arg6[%c0, %c0_1] : memref<256x64xf32, #tpu.memory_space<vmem>>, vector<256x64xf32>
    %c0_2 = arith.constant 0 : index
    %c0_3 = arith.constant 0 : index
    %4 = vector.load %arg2[%c0_2, %c0_3] : memref<256x49xbf16, #tpu.memory_space<vmem>>, vector<256x49xbf16>
    %c0_4 = arith.constant 0 : index
    %c0_5 = arith.constant 0 : index
    %5 = vector.load %arg3[%c0_4, %c0_5] : memref<49x64xbf16, #tpu.memory_space<vmem>>, vector<49x64xbf16>
    %cst = arith.constant dense<0.000000e+00> : vector<256x64xf32>
    %6 = tpu.matmul %4, %5, %cst {dimension_numbers = #tpu.dot_dimension_numbers<[1], [0], [0], [1], [0, 0, 1, 1], [], []>} : vector<256x49xbf16>, vector<49x64xbf16>, vector<256x64xf32> -> vector<256x64xf32>
    %7 = arith.addf %3, %6 : vector<256x64xf32>
    %c0_6 = arith.constant 0 : index
    %c0_7 = arith.constant 0 : index
    %8 = vector.load %arg6[%c0_6, %c0_7] : memref<256x64xf32, #tpu.memory_space<vmem>>, vector<256x64xf32>
    tpu.vector_store %arg6[%c0_6, %c0_7], %7 {strides = array<i32>} : memref<256x64xf32, #tpu.memory_space<vmem>>, vector<256x64xf32>,
    %c0_i32_8 = arith.constant 0 : i32
    %9 = arith.cmpi eq, %arg1, %c0_i32_8 : i32
    %10 = arith.extui %9 : i1 to i32
    %c0_i32_9 = arith.constant 0 : i32
    %11 = arith.cmpi ne, %10, %c0_i32_9 : i32
    scf.if %11 {
      %c0_10 = arith.constant 0 : index
      %c0_11 = arith.constant 0 : index
      %12 = vector.load %arg6[%c0_10, %c0_11] : memref<256x64xf32, #tpu.memory_space<vmem>>, vector<256x64xf32>
      %c0_12 = arith.constant 0 : index
      %c0_13 = arith.constant 0 : index
      %13 = vector.load %arg4[%c0_12, %c0_13] : memref<1x64xf32, #tpu.memory_space<vmem>>, vector<1x64xf32>
      %14 = vector.broadcast %13 : vector<1x64xf32> to vector<256x64xf32>
      %15 = arith.addf %12, %14 : vector<256x64xf32>
      %cst_14 = arith.constant 0.000000e+00 : f32
      %16 = vector.broadcast %cst_14 : f32 to vector<256x64xf32>
      %17 = arith.maximumf %15, %16 : vector<256x64xf32>
      %c0_15 = arith.constant 0 : index
      %c0_16 = arith.constant 0 : index
      %18 = vector.load %arg5[%c0_15, %c0_16] : memref<256x64xf32, #tpu.memory_space<vmem>>, vector<256x64xf32>
      tpu.vector_store %arg5[%c0_15, %c0_16], %17 {strides = array<i32>} : memref<256x64xf32, #tpu.memory_space<vmem>>, vector<256x64xf32>,
    } else {
    }
    return
  }
  func.func @transform_0(%arg0: i32, %arg1: i32) -> (i32, i32) {
    %c0_i32 = arith.constant 0 : i32
    return %arg0, %arg1 : i32, i32
  }
  func.func @transform_1(%arg0: i32, %arg1: i32) -> (i32, i32) {
    %c0_i32 = arith.constant 0 : i32
    %c0_i32_0 = arith.constant 0 : i32
    return %arg1, %c0_i32 : i32, i32
  }
  func.func @transform_2(%arg0: i32, %arg1: i32) -> (i32, i32) {
    %c0_i32 = arith.constant 0 : i32
    %c0_i32_0 = arith.constant 0 : i32
    %c0_i32_1 = arith.constant 0 : i32
    return %c0_i32, %c0_i32_0 : i32, i32
  }
  func.func @transform_3(%arg0: i32, %arg1: i32) -> (i32, i32) {
    %c0_i32 = arith.constant 0 : i32
    %c0_i32_0 = arith.constant 0 : i32
    return %arg0, %c0_i32 : i32, i32
  }
}

</mosaic_0001>

<bundles_post_ra>
// kernel: tpu_custom_call.1
= control target key start
LH: loop header
LB: loop body
LE: loop exit
PB: predicated region body
PF: predicated region fallthrough
CT: control target
= control target key end

     0   :  { %s1140_s12 = smov 0   ;;  %s1142_s13 = smov 0   ;;  %s1403_s0 = inlined_call_operand.vmem [shape: bf16[512,49], index: 0, kind: input, shape index: {}]   ;;  %s1404_s1 = inlined_call_operand.vmem [shape: bf16[49,64], index: 1, kind: input, shape index: {}]   ;;  %s1405_s2 = inlined_call_operand.vmem [shape: f32[1,64], index: 2, kind: input, shape index: {}]   ;;  %s1406_s3 = inlined_call_operand.vmem [shape: f32[512,64], index: 3, kind: output, shape index: {}]  }
   0x1   :  { %s1144_s14 = smov 0  }
   0x2 LB: > { %s25_s15 = sadd.s32 1, %s1112_s13  ;;  %p936_p0 = scmp.ge.s32.totalorder %s1116_s14, 1  ;;  %s1116_s14 = sphi %s1144_s14, %s13_s14   ;;  %s1112_s13 = sphi %s1142_s13, %s1409_s13   ;;  %s1108_s12 = sphi %s1140_s12, %s1408_s12  }
   0x3   : > { %p27_p1 = scmp.ge.s32.totalorder %s25_s15, 2  ;;  %p166_p2 = scmp.lt.s32.totalorder %s1116_s14, 3 }
   0x5   : > { %s1411_s15 = smov (%p27_p1, %s25_s15), 0  ;;  %p167_p3 = pnand %p936_p0, %p166_p2 }
   0x6   : > { %s937_s20 = sshll.u32 (!%p167_p3), %s1108_s12, 5 }
   0x7   : > { %170 = sbr.rel (%p167_p3) target bundleno = 271 (0x10f), region = 32  ;;  %p1169_p4 = scmp.lt.s32.totalorder (!%p167_p3), %s937_s20, 63 }
   0xc   : > { %v1074_v0 = vld [vmem:[%s1404_s1 + $0x18] ss:$0 sps:$4 sm:$0x11]   ;;  %vm478_vm0 = vcmask 1040384   ;;  %v1118_v1 = vmov 0   ;;  %v1075_v4 = vld [vmem:[%s1404_s1 + $0x10] sm:$0xff]  }
   0xd   : > { %v480_v2 = vsel %vm478_vm0, 65535, %v1118_v1  ;;  %vm224_vm1 = vcmask 523264   ;;  %v1119_v5 = vmov 0.0   ;;  %s1413_s20 = smov (!%p1169_p4, %s937_s20), 63  ;;  %v1076_v6 = vld [vmem:[%s1404_s1 + $0x8] sm:$0xff]   ;;  %v1077_v7 = vld [vmem:[%s1404_s1] sm:$0xff]  }
   0xe   : > { %v482_v3 = vand.u32 %v1074_v0, %v480_v2  ;;  %227 = vst.msk [vmem:[#allocation2 + $0x10] sm:$0xff] %vm224_vm1, %v1119_v5  ;;  %225 = vst.msk [vmem:[#allocation2] sm:$0xff] %vm224_vm1, %v1119_v5  ;;  %s938_s24 = sshll.u32 %s1413_s20, 2  ;;  %vm429_vm2 = vcmask 400384   ;;  %v1264_v50 = vld [vmem:[%s1405_s2] ss:$0 sm:$0xff] }
   0xf   : > { %226 = vst.msk [vmem:[#allocation2 + $0x8] sm:$0xff] %vm224_vm1, %v1119_v5  ;;  %228 = vst.msk [vmem:[#allocation2 + $0x18] sm:$0xff] %vm224_vm1, %v1119_v5  ;;  %s1221_s29 = scalar_lea.vmem %s1403_s0, %s938_s24  ;;  %s940_s5 = sshll.u32 %s1413_s20, 3 }
  0x10   : > { %1000 = vmatprep.subr.bf16.mxu0 %v482_v3  ;;  %1040 = vmatprep.subr.bf16.mxu1 %v482_v3  ;;  %229 = vst.msk [vmem:[#allocation2 + $0x20] sm:$0xff] %vm224_vm1, %v1119_v5  ;;  %230 = vst.msk [vmem:[#allocation2 + $0x28] sm:$0xff] %vm224_vm1, %v1119_v5  ;;  %v1078_v8 = vld [vmem:[%s1221_s29] sm:$0xff]   ;;  %v1080_v10 = vld [vmem:[%s1221_s29 + $0x8] sm:$0xff]   ;;  %s1276_s8 = scalar_lea.vmem %s1406_s3, %s940_s5 }
  0x11   : > { %231 = vst.msk [vmem:[#allocation2 + $0x30] sm:$0xff] %vm224_vm1, %v1119_v5  ;;  %232 = vst.msk [vmem:[#allocation2 + $0x38] sm:$0xff] %vm224_vm1, %v1119_v5  ;;  %1001 = vmatpush3.bf16.msra.mxu0 %v482_v3  ;;  %1044 = vmatpush3.bf16.msra.mxu1 %v482_v3  ;;  %v1079_v9 = vld [vmem:[%s1221_s29 + $0x40] sm:$0xff]   ;;  %v1081_v11 = vld [vmem:[%s1221_s29 + $0x48] sm:$0xff]  }
  0x12   : > { %233 = vst.msk [vmem:[#allocation2 + $0x40] sm:$0xff] %vm224_vm1, %v1119_v5  ;;  %234 = vst.msk [vmem:[#allocation2 + $0x48] sm:$0xff] %vm224_vm1, %v1119_v5  ;;  %1002 = vmatprep.subr.bf16.mxu0 %v1075_v4  ;;  %1041 = vmatprep.subr.bf16.mxu1 %v1075_v4  ;;  %v1082_v12 = vld [vmem:[%s1221_s29 + $0x10] sm:$0xff]   ;;  %v1084_v14 = vld [vmem:[%s1221_s29 + $0x18] sm:$0xff]  }
  0x13   : > { %235 = vst.msk [vmem:[#allocation2 + $0x50] sm:$0xff] %vm224_vm1, %v1119_v5  ;;  %236 = vst.msk [vmem:[#allocation2 + $0x58] sm:$0xff] %vm224_vm1, %v1119_v5  ;;  %1008 = vmatprep.mubr.msk.bf16.mxu0 %vm429_vm2, %v1078_v8  ;;  %1024 = vmatprep.mubr.msk.bf16.mxu1 %vm429_vm2, %v1079_v9  ;;  %v1083_v13 = vld [vmem:[%s1221_s29 + $0x50] sm:$0xff]   ;;  %v1085_v15 = vld [vmem:[%s1221_s29 + $0x58] sm:$0xff]  }
  0x14   : > { %237 = vst.msk [vmem:[#allocation2 + $0x60] sm:$0xff] %vm224_vm1, %v1119_v5  ;;  %238 = vst.msk [vmem:[#allocation2 + $0x68] sm:$0xff] %vm224_vm1, %v1119_v5  ;;  %v1086_v16 = vld [vmem:[%s1221_s29 + $0x20] sm:$0xff]   ;;  %v1088_v18 = vld [vmem:[%s1221_s29 + $0x28] sm:$0xff]  }
  0x15   : > { %239 = vst.msk [vmem:[#allocation2 + $0x70] sm:$0xff] %vm224_vm1, %v1119_v5  ;;  %240 = vst.msk [vmem:[#allocation2 + $0x78] sm:$0xff] %vm224_vm1, %v1119_v5  ;;  %1003 = vmatpush3.bf16.msra.mxu0 %v1075_v4  ;;  %1045 = vmatpush3.bf16.msra.mxu1 %v1075_v4  ;;  %v1087_v17 = vld [vmem:[%s1221_s29 + $0x60] sm:$0xff]   ;;  %v1089_v19 = vld [vmem:[%s1221_s29 + $0x68] sm:$0xff]  }
  0x16   : > { %241 = vst.msk [vmem:[#allocation2 + $0x80] sm:$0xff] %vm224_vm1, %v1119_v5  ;;  %242 = vst.msk [vmem:[#allocation2 + $0x88] sm:$0xff] %vm224_vm1, %v1119_v5  ;;  %1004 = vmatprep.subr.bf16.mxu0 %v1076_v6  ;;  %1042 = vmatprep.subr.bf16.mxu1 %v1076_v6  ;;  %v1090_v20 = vld [vmem:[%s1221_s29 + $0x30] sm:$0xff]   ;;  %v1092_v22 = vld [vmem:[%s1221_s29 + $0x38] sm:$0xff]  }
  0x17   : > { %243 = vst.msk [vmem:[#allocation2 + $0x90] sm:$0xff] %vm224_vm1, %v1119_v5  ;;  %244 = vst.msk [vmem:[#allocation2 + $0x98] sm:$0xff] %vm224_vm1, %v1119_v5  ;;  %v1091_v21 = vld [vmem:[%s1221_s29 + $0x70] sm:$0xff]   ;;  %v1093_v23 = vld [vmem:[%s1221_s29 + $0x78] sm:$0xff]  }
  0x18   : > { %245 = vst.msk [vmem:[#allocation2 + $0xa0] sm:$0xff] %vm224_vm1, %v1119_v5  ;;  %246 = vst.msk [vmem:[#allocation2 + $0xa8] sm:$0xff] %vm224_vm1, %v1119_v5  ;;  %v259_v24 = vld [vmem:[#allocation2 + $0x10] sm:$0xff]  ;;  %v257_v28 = vld [vmem:[#allocation2] sm:$0xff] }
  0x19   : > { %247 = vst.msk [vmem:[#allocation2 + $0xb0] sm:$0xff] %vm224_vm1, %v1119_v5  ;;  %248 = vst.msk [vmem:[#allocation2 + $0xb8] sm:$0xff] %vm224_vm1, %v1119_v5  ;;  %1005 = vmatpush3.bf16.msra.mxu0 %v1076_v6  ;;  %1046 = vmatpush3.bf16.msra.mxu1 %v1076_v6  ;;  %v260_v34 = vld [vmem:[#allocation2 + $0x18] sm:$0xff]  ;;  %v258_v40 = vld [vmem:[#allocation2 + $0x8] sm:$0xff] }
  0x1a   : > { %249 = vst.msk [vmem:[#allocation2 + $0xc0] sm:$0xff] %vm224_vm1, %v1119_v5  ;;  %250 = vst.msk [vmem:[#allocation2 + $0xc8] sm:$0xff] %vm224_vm1, %v1119_v5  ;;  %1006 = vmatprep.subr.bf16.mxu0 %v1077_v7  ;;  %1043 = vmatprep.subr.bf16.mxu1 %v1077_v7  ;;  %v263_v46 = vld [vmem:[#allocation2 + $0x30] sm:$0xff]  ;;  %v261_v53 = vld [vmem:[#allocation2 + $0x20] sm:$0xff] }
  0x1b   : > { %251 = vst.msk [vmem:[#allocation2 + $0xd0] sm:$0xff] %vm224_vm1, %v1119_v5  ;;  %252 = vst.msk [vmem:[#allocation2 + $0xd8] sm:$0xff] %vm224_vm1, %v1119_v5  ;;  %v264_v1 = vld [vmem:[#allocation2 + $0x38] sm:$0xff] }
  0x1c   : > { %253 = vst.msk [vmem:[#allocation2 + $0xe0] sm:$0xff] %vm224_vm1, %v1119_v5  ;;  %254 = vst.msk [vmem:[#allocation2 + $0xe8] sm:$0xff] %vm224_vm1, %v1119_v5 }
  0x1d   : > { %255 = vst.msk [vmem:[#allocation2 + $0xf0] sm:$0xff] %vm224_vm1, %v1119_v5  ;;  %256 = vst.msk [vmem:[#allocation2 + $0xf8] sm:$0xff] %vm224_vm1, %v1119_v5  ;;  %1007 = vmatpush3.bf16.msra.mxu0 %v1077_v7  ;;  %1047 = vmatpush3.bf16.msra.mxu1 %v1077_v7  ;;  %v273_v29 = vld [vmem:[#allocation2 + $0x80] sm:$0xff]  ;;  %v274_v41 = vld [vmem:[#allocation2 + $0x88] sm:$0xff] }
  0x1e   : > { %v275_v25 = vld [vmem:[#allocation2 + $0x90] sm:$0xff]  ;;  %v276_v35 = vld [vmem:[#allocation2 + $0x98] sm:$0xff] }
  0x1f   : > { %v277_v54 = vld [vmem:[#allocation2 + $0xa0] sm:$0xff] }
  0x20   : > { %1009 = vmatmul.mubr.msk.bf16.vlgmr.msra.gmra.mxu0 %vm429_vm2, %v1080_v10  ;;  %1025 = vmatmul.mubr.msk.bf16.vlgmr.msra.gmra.mxu1 %vm429_vm2, %v1081_v11  ;;  %v279_v47 = vld [vmem:[#allocation2 + $0xb0] sm:$0xff]  ;;  %v280_v2 = vld [vmem:[#allocation2 + $0xb8] sm:$0xff]  ;;  %v262_v11 = vld [vmem:[#allocation2 + $0x28] sm:$0xff] }
  0x21   : > { %1012 = vmatprep.mubr.msk.bf16.mxu0 %vm429_vm2, %v1082_v12  ;;  %1028 = vmatprep.mubr.msk.bf16.mxu1 %vm429_vm2, %v1083_v13  ;;  %v278_v12 = vld [vmem:[#allocation2 + $0xa8] sm:$0xff] }
  0x28   : > { %1013 = vmatmul.mubr.msk.bf16.gmra.mxu0 %vm429_vm2, %v1084_v14  ;;  %1029 = vmatmul.mubr.msk.bf16.gmra.mxu1 %vm429_vm2, %v1085_v15 }
  0x29   : > { %1016 = vmatprep.mubr.msk.bf16.mxu0 %vm429_vm2, %v1086_v16  ;;  %1032 = vmatprep.mubr.msk.bf16.mxu1 %vm429_vm2, %v1087_v17 }
  0x30   : > { %1017 = vmatmul.mubr.msk.bf16.gmra.mxu0 %vm429_vm2, %v1088_v18  ;;  %1033 = vmatmul.mubr.msk.bf16.gmra.mxu1 %vm429_vm2, %v1089_v19 }
  0x31   : > { %1020 = vmatprep.mubr.msk.bf16.mxu0 %vm429_vm2, %v1090_v20  ;;  %1036 = vmatprep.mubr.msk.bf16.mxu1 %vm429_vm2, %v1091_v21 }
  0x38   : > { %1021 = vmatmul.mubr.msk.bf16.gmra.mxu0 %vm429_vm2, %v1092_v22  ;;  %1037 = vmatmul.mubr.msk.bf16.gmra.mxu1 %vm429_vm2, %v1093_v23  ;;  %v267_v23 = vld [vmem:[#allocation2 + $0x50] sm:$0xff] }
  0xe0   : > { %v1010_v26 = vpop.f32.mrf.mxu0  ;;  %v1026_v27 = vpop.f32.mrf.mxu1 }
  0xe1   : > { %v647_v30 = vadd.f32 %v1010_v26, %v259_v24  ;;  %v663_v31 = vadd.f32 %v1026_v27, %v275_v25  ;;  %v283_v24 = vld [vmem:[#allocation2 + $0xd0] sm:$0xff] }
  0xe2   : > { %v518_v32 = vpop.f32.mrf.mxu0  ;;  %v582_v33 = vpop.f32.mrf.mxu1 }
  0xe3   : > { %680 = vst.msk [vmem:[#allocation2 + $0x10] sm:$0xff] %vm224_vm1, %v647_v30  ;;  %696 = vst.msk [vmem:[#allocation2 + $0x90] sm:$0xff] %vm224_vm1, %v663_v31  ;;  %v645_v36 = vadd.f32 %v518_v32, %v257_v28  ;;  %v661_v37 = vadd.f32 %v582_v33, %v273_v29 }
  0xe4   : > { %v1011_v38 = vpop.f32.mrf.mxu0  ;;  %v1027_v39 = vpop.f32.mrf.mxu1 }
  0xe5   : > { %678 = vst.msk [vmem:[#allocation2] sm:$0xff] %vm224_vm1, %v645_v36  ;;  %694 = vst.msk [vmem:[#allocation2 + $0x80] sm:$0xff] %vm224_vm1, %v661_v37  ;;  %v648_v42 = vadd.f32 %v1011_v38, %v260_v34  ;;  %v664_v43 = vadd.f32 %v1027_v39, %v276_v35  ;;  %v265_v35 = vld [vmem:[#allocation2 + $0x40] sm:$0xff] }
  0xe6   : > { %v521_v44 = vpop.f32.mrf.mxu0  ;;  %v585_v45 = vpop.f32.mrf.mxu1  ;;  %v281_v36 = vld [vmem:[#allocation2 + $0xc0] sm:$0xff] }
  0xe7   : > { %681 = vst.msk [vmem:[#allocation2 + $0x18] sm:$0xff] %vm224_vm1, %v648_v42  ;;  %697 = vst.msk [vmem:[#allocation2 + $0x98] sm:$0xff] %vm224_vm1, %v664_v43  ;;  %v646_v48 = vadd.f32 %v521_v44, %v258_v40  ;;  %v662_v49 = vadd.f32 %v585_v45, %v274_v41 }
  0xe8   : > { %v1014_v51 = vpop.f32.mrf.mxu0  ;;  %v1030_v52 = vpop.f32.mrf.mxu1 }
  0xe9   : > { %679 = vst.msk [vmem:[#allocation2 + $0x8] sm:$0xff] %vm224_vm1, %v646_v48  ;;  %695 = vst.msk [vmem:[#allocation2 + $0x88] sm:$0xff] %vm224_vm1, %v662_v49  ;;  %v651_v55 = vadd.f32 %v1014_v51, %v263_v46  ;;  %v667_v56 = vadd.f32 %v1030_v52, %v279_v47  ;;  %v268_v47 = vld [vmem:[#allocation2 + $0x58] sm:$0xff]  ;;  %v266_v49 = vld [vmem:[#allocation2 + $0x48] sm:$0xff] }
  0xea   : > { %v715_v57 = vld [vmem:[#allocation2 + $0x10] sm:$0xff]  ;;  %v534_v59 = vpop.f32.mrf.mxu0  ;;  %v598_v60 = vpop.f32.mrf.mxu1  ;;  %v284_v48 = vld [vmem:[#allocation2 + $0xd8] sm:$0xff] }
  0xeb   : > { %v731_v58 = vld [vmem:[#allocation2 + $0x90] sm:$0xff]  ;;  %v754_v61 = vadd.f32 %v1264_v50, %v715_v57  ;;  %684 = vst.msk [vmem:[#allocation2 + $0x30] sm:$0xff] %vm224_vm1, %v651_v55  ;;  %700 = vst.msk [vmem:[#allocation2 + $0xb0] sm:$0xff] %vm224_vm1, %v667_v56  ;;  %v649_v63 = vadd.f32 %v534_v59, %v261_v53  ;;  %v665_v0 = vadd.f32 %v598_v60, %v277_v54  ;;  %v282_v57 = vld [vmem:[#allocation2 + $0xc8] sm:$0xff] }
  0xec   : > { %v770_v62 = vadd.f32 %v1264_v50, %v731_v58  ;;  %v713_v3 = vld [vmem:[#allocation2] sm:$0xff]  ;;  %v1015_v5 = vpop.f32.mrf.mxu0  ;;  %v1031_v6 = vpop.f32.mrf.mxu1 }
  0xed   : > { %v729_v4 = vld [vmem:[#allocation2 + $0x80] sm:$0xff]  ;;  %v786_v7 = vmax.f32 %v754_v61, 0.0  ;;  %v752_v9 = vadd.f32 %v1264_v50, %v713_v3  ;;  %682 = vst.msk [vmem:[#allocation2 + $0x20] sm:$0xff] %vm224_vm1, %v649_v63  ;;  %698 = vst.msk [vmem:[#allocation2 + $0xa0] sm:$0xff] %vm224_vm1, %v665_v0  ;;  %v652_v15 = vadd.f32 %v1015_v5, %v264_v1  ;;  %v668_v16 = vadd.f32 %v1031_v6, %v280_v2  ;;  %v271_v2 = vld [vmem:[#allocation2 + $0x70] sm:$0xff] }
  0xee   : > { %v802_v8 = vmax.f32 %v770_v62, 0.0  ;;  %v768_v10 = vadd.f32 %v1264_v50, %v729_v4  ;;  %v716_v13 = vld [vmem:[#allocation2 + $0x18] sm:$0xff]  ;;  %v537_v17 = vpop.f32.mrf.mxu0  ;;  %v601_v18 = vpop.f32.mrf.mxu1  ;;  %v287_v3 = vld [vmem:[#allocation2 + $0xf0] sm:$0xff] }
  0xef   : > { %v732_v14 = vld [vmem:[#allocation2 + $0x98] sm:$0xff]  ;;  %818 = vst.msk [vmem:[%s1276_s8 + $0x10] sm:$0xff] %vm224_vm1, %v786_v7  ;;  %v784_v19 = vmax.f32 %v752_v9, 0.0  ;;  %v755_v21 = vadd.f32 %v1264_v50, %v716_v13  ;;  %685 = vst.msk [vmem:[#allocation2 + $0x38] sm:$0xff] %vm224_vm1, %v652_v15  ;;  %v650_v27 = vadd.f32 %v537_v17, %v262_v11  ;;  %v666_v28 = vadd.f32 %v601_v18, %v278_v12  ;;  %v285_v15 = vld [vmem:[#allocation2 + $0xe0] sm:$0xff] }
  0xf0   : > { %834 = vst.msk [vmem:[%s1276_s8 + $0x90] sm:$0xff] %vm224_vm1, %v802_v8  ;;  %v800_v20 = vmax.f32 %v768_v10, 0.0  ;;  %v771_v22 = vadd.f32 %v1264_v50, %v732_v14  ;;  %v714_v25 = vld [vmem:[#allocation2 + $0x8] sm:$0xff]  ;;  %701 = vst.msk [vmem:[#allocation2 + $0xb8] sm:$0xff] %vm224_vm1, %v668_v16  ;;  %v1018_v29 = vpop.f32.mrf.mxu0  ;;  %v1034_v30 = vpop.f32.mrf.mxu1  ;;  %v269_v14 = vld [vmem:[#allocation2 + $0x60] sm:$0xff] }
  0xf1   : > { %v730_v26 = vld [vmem:[#allocation2 + $0x88] sm:$0xff]  ;;  %816 = vst.msk [vmem:[%s1276_s8] sm:$0xff] %vm224_vm1, %v784_v19  ;;  %v787_v31 = vmax.f32 %v755_v21, 0.0  ;;  %v753_v33 = vadd.f32 %v1264_v50, %v714_v25  ;;  %683 = vst.msk [vmem:[#allocation2 + $0x28] sm:$0xff] %vm224_vm1, %v650_v27  ;;  %v655_v39 = vadd.f32 %v1018_v29, %v267_v23  ;;  %v671_v40 = vadd.f32 %v1034_v30, %v283_v24  ;;  %v288_v27 = vld [vmem:[#allocation2 + $0xf8] sm:$0xff] }
  0xf2   : > { %832 = vst.msk [vmem:[%s1276_s8 + $0x80] sm:$0xff] %vm224_vm1, %v800_v20  ;;  %v803_v32 = vmax.f32 %v771_v22, 0.0  ;;  %v769_v34 = vadd.f32 %v1264_v50, %v730_v26  ;;  %v719_v37 = vld [vmem:[#allocation2 + $0x30] sm:$0xff]  ;;  %699 = vst.msk [vmem:[#allocation2 + $0xa8] sm:$0xff] %vm224_vm1, %v666_v28  ;;  %v550_v41 = vpop.f32.mrf.mxu0  ;;  %v614_v42 = vpop.f32.mrf.mxu1  ;;  %v272_v26 = vld [vmem:[#allocation2 + $0x78] sm:$0xff] }
  0xf3   : > { %v735_v38 = vld [vmem:[#allocation2 + $0xb0] sm:$0xff]  ;;  %819 = vst.msk [vmem:[%s1276_s8 + $0x18] sm:$0xff] %vm224_vm1, %v787_v31  ;;  %v785_v43 = vmax.f32 %v753_v33, 0.0  ;;  %v758_v45 = vadd.f32 %v1264_v50, %v719_v37  ;;  %688 = vst.msk [vmem:[#allocation2 + $0x50] sm:$0xff] %vm224_vm1, %v655_v39  ;;  %v653_v53 = vadd.f32 %v550_v41, %v265_v35  ;;  %v669_v54 = vadd.f32 %v614_v42, %v281_v36  ;;  %v286_v39 = vld [vmem:[#allocation2 + $0xe8] sm:$0xff] }
  0xf4   : > { %835 = vst.msk [vmem:[%s1276_s8 + $0x98] sm:$0xff] %vm224_vm1, %v803_v32  ;;  %v801_v44 = vmax.f32 %v769_v34, 0.0  ;;  %v774_v46 = vadd.f32 %v1264_v50, %v735_v38  ;;  %v717_v51 = vld [vmem:[#allocation2 + $0x20] sm:$0xff]  ;;  %704 = vst.msk [vmem:[#allocation2 + $0xd0] sm:$0xff] %vm224_vm1, %v671_v40  ;;  %v1019_v55 = vpop.f32.mrf.mxu0  ;;  %v1035_v56 = vpop.f32.mrf.mxu1  ;;  %v270_v38 = vld [vmem:[#allocation2 + $0x68] sm:$0xff] }
  0xf5   : > { %v733_v52 = vld [vmem:[#allocation2 + $0xa0] sm:$0xff]  ;;  %817 = vst.msk [vmem:[%s1276_s8 + $0x8] sm:$0xff] %vm224_vm1, %v785_v43  ;;  %v790_v58 = vmax.f32 %v758_v45, 0.0  ;;  %v756_v60 = vadd.f32 %v1264_v50, %v717_v51  ;;  %686 = vst.msk [vmem:[#allocation2 + $0x40] sm:$0xff] %vm224_vm1, %v653_v53  ;;  %v656_v62 = vadd.f32 %v1019_v55, %v268_v47  ;;  %v672_v63 = vadd.f32 %v1035_v56, %v284_v48 }
  0xf6   : > { %833 = vst.msk [vmem:[%s1276_s8 + $0x88] sm:$0xff] %vm224_vm1, %v801_v44  ;;  %v806_v59 = vmax.f32 %v774_v46, 0.0  ;;  %v772_v61 = vadd.f32 %v1264_v50, %v733_v52  ;;  %702 = vst.msk [vmem:[#allocation2 + $0xc0] sm:$0xff] %vm224_vm1, %v669_v54  ;;  %v553_v0 = vpop.f32.mrf.mxu0  ;;  %v617_v1 = vpop.f32.mrf.mxu1  ;;  %v720_v6 = vld [vmem:[#allocation2 + $0x38] sm:$0xff] }
  0xf7   : > { %822 = vst.msk [vmem:[%s1276_s8 + $0x30] sm:$0xff] %vm224_vm1, %v790_v58  ;;  %v788_v4 = vmax.f32 %v756_v60, 0.0  ;;  %v736_v7 = vld [vmem:[#allocation2 + $0xb8] sm:$0xff]  ;;  %v654_v8 = vadd.f32 %v553_v0, %v266_v49  ;;  %v670_v9 = vadd.f32 %v617_v1, %v282_v57  ;;  %v759_v10 = vadd.f32 %v1264_v50, %v720_v6  ;;  %689 = vst.msk [vmem:[#allocation2 + $0x58] sm:$0xff] %vm224_vm1, %v656_v62 }
  0xf8   : > { %838 = vst.msk [vmem:[%s1276_s8 + $0xb0] sm:$0xff] %vm224_vm1, %v806_v59  ;;  %v804_v5 = vmax.f32 %v772_v61, 0.0  ;;  %v775_v11 = vadd.f32 %v1264_v50, %v736_v7  ;;  %705 = vst.msk [vmem:[#allocation2 + $0xd8] sm:$0xff] %vm224_vm1, %v672_v63  ;;  %v1022_v12 = vpop.f32.mrf.mxu0  ;;  %v1038_v13 = vpop.f32.mrf.mxu1  ;;  %v718_v16 = vld [vmem:[#allocation2 + $0x28] sm:$0xff] }
  0xf9   : > { %820 = vst.msk [vmem:[%s1276_s8 + $0x20] sm:$0xff] %vm224_vm1, %v788_v4  ;;  %v734_v17 = vld [vmem:[#allocation2 + $0xa8] sm:$0xff]  ;;  %687 = vst.msk [vmem:[#allocation2 + $0x48] sm:$0xff] %vm224_vm1, %v654_v8  ;;  %v659_v18 = vadd.f32 %v1022_v12, %v271_v2  ;;  %v675_v19 = vadd.f32 %v1038_v13, %v287_v3  ;;  %v791_v20 = vmax.f32 %v759_v10, 0.0  ;;  %v757_v22 = vadd.f32 %v1264_v50, %v718_v16 }
  0xfa   : > { %836 = vst.msk [vmem:[%s1276_s8 + $0xa0] sm:$0xff] %vm224_vm1, %v804_v5  ;;  %703 = vst.msk [vmem:[#allocation2 + $0xc8] sm:$0xff] %vm224_vm1, %v670_v9  ;;  %v807_v21 = vmax.f32 %v775_v11, 0.0  ;;  %v773_v23 = vadd.f32 %v1264_v50, %v734_v17  ;;  %v566_v24 = vpop.f32.mrf.mxu0  ;;  %v630_v25 = vpop.f32.mrf.mxu1  ;;  %v723_v28 = vld [vmem:[#allocation2 + $0x50] sm:$0xff] }
  0xfb   : > { %v739_v29 = vld [vmem:[#allocation2 + $0xd0] sm:$0xff]  ;;  %692 = vst.msk [vmem:[#allocation2 + $0x70] sm:$0xff] %vm224_vm1, %v659_v18  ;;  %708 = vst.msk [vmem:[#allocation2 + $0xf0] sm:$0xff] %vm224_vm1, %v675_v19  ;;  %v657_v30 = vadd.f32 %v566_v24, %v269_v14  ;;  %v673_v31 = vadd.f32 %v630_v25, %v285_v15  ;;  %v789_v32 = vmax.f32 %v757_v22, 0.0  ;;  %v762_v34 = vadd.f32 %v1264_v50, %v723_v28 }
  0xfc   : > { %823 = vst.msk [vmem:[%s1276_s8 + $0x38] sm:$0xff] %vm224_vm1, %v791_v20  ;;  %839 = vst.msk [vmem:[%s1276_s8 + $0xb8] sm:$0xff] %vm224_vm1, %v807_v21  ;;  %v805_v33 = vmax.f32 %v773_v23, 0.0  ;;  %v778_v35 = vadd.f32 %v1264_v50, %v739_v29  ;;  %v1023_v36 = vpop.f32.mrf.mxu0  ;;  %v1039_v37 = vpop.f32.mrf.mxu1  ;;  %v721_v40 = vld [vmem:[#allocation2 + $0x40] sm:$0xff] }
  0xfd   : > { %v737_v41 = vld [vmem:[#allocation2 + $0xc0] sm:$0xff]  ;;  %690 = vst.msk [vmem:[#allocation2 + $0x60] sm:$0xff] %vm224_vm1, %v657_v30  ;;  %706 = vst.msk [vmem:[#allocation2 + $0xe0] sm:$0xff] %vm224_vm1, %v673_v31  ;;  %v660_v42 = vadd.f32 %v1023_v36, %v272_v26  ;;  %v676_v43 = vadd.f32 %v1039_v37, %v288_v27  ;;  %v794_v44 = vmax.f32 %v762_v34, 0.0  ;;  %v760_v46 = vadd.f32 %v1264_v50, %v721_v40 }
  0xfe   : > { %821 = vst.msk [vmem:[%s1276_s8 + $0x28] sm:$0xff] %vm224_vm1, %v789_v32  ;;  %837 = vst.msk [vmem:[%s1276_s8 + $0xa8] sm:$0xff] %vm224_vm1, %v805_v33  ;;  %v810_v45 = vmax.f32 %v778_v35, 0.0  ;;  %v776_v47 = vadd.f32 %v1264_v50, %v737_v41  ;;  %v569_v48 = vpop.f32.mrf.mxu0  ;;  %v633_v49 = vpop.f32.mrf.mxu1  ;;  %v724_v51 = vld [vmem:[#allocation2 + $0x58] sm:$0xff] }
  0xff   : > { %v740_v52 = vld [vmem:[#allocation2 + $0xd8] sm:$0xff]  ;;  %693 = vst.msk [vmem:[#allocation2 + $0x78] sm:$0xff] %vm224_vm1, %v660_v42  ;;  %709 = vst.msk [vmem:[#allocation2 + $0xf8] sm:$0xff] %vm224_vm1, %v676_v43  ;;  %v658_v53 = vadd.f32 %v569_v48, %v270_v38  ;;  %v674_v54 = vadd.f32 %v633_v49, %v286_v39  ;;  %v792_v55 = vmax.f32 %v760_v46, 0.0  ;;  %v763_v57 = vadd.f32 %v1264_v50, %v724_v51 }
 0x100   : > { %826 = vst.msk [vmem:[%s1276_s8 + $0x50] sm:$0xff] %vm224_vm1, %v794_v44  ;;  %842 = vst.msk [vmem:[%s1276_s8 + $0xd0] sm:$0xff] %vm224_vm1, %v810_v45  ;;  %v808_v56 = vmax.f32 %v776_v47, 0.0  ;;  %v779_v58 = vadd.f32 %v1264_v50, %v740_v52  ;;  %v722_v59 = vld [vmem:[#allocation2 + $0x48] sm:$0xff] }
 0x101   : > { %v738_v60 = vld [vmem:[#allocation2 + $0xc8] sm:$0xff]  ;;  %v761_v61 = vadd.f32 %v1264_v50, %v722_v59  ;;  %691 = vst.msk [vmem:[#allocation2 + $0x68] sm:$0xff] %vm224_vm1, %v658_v53  ;;  %707 = vst.msk [vmem:[#allocation2 + $0xe8] sm:$0xff] %vm224_vm1, %v674_v54  ;;  %v795_v63 = vmax.f32 %v763_v57, 0.0 }
 0x102   : > { %v777_v62 = vadd.f32 %v1264_v50, %v738_v60  ;;  %824 = vst.msk [vmem:[%s1276_s8 + $0x40] sm:$0xff] %vm224_vm1, %v792_v55  ;;  %840 = vst.msk [vmem:[%s1276_s8 + $0xc0] sm:$0xff] %vm224_vm1, %v808_v56  ;;  %v811_v0 = vmax.f32 %v779_v58, 0.0  ;;  %v727_v1 = vld [vmem:[#allocation2 + $0x70] sm:$0xff] }
 0x103   : > { %v743_v2 = vld [vmem:[#allocation2 + $0xf0] sm:$0xff]  ;;  %v793_v3 = vmax.f32 %v761_v61, 0.0  ;;  %v766_v5 = vadd.f32 %v1264_v50, %v727_v1  ;;  %827 = vst.msk [vmem:[%s1276_s8 + $0x58] sm:$0xff] %vm224_vm1, %v795_v63 }
 0x104   : > { %v809_v4 = vmax.f32 %v777_v62, 0.0  ;;  %v782_v6 = vadd.f32 %v1264_v50, %v743_v2  ;;  %843 = vst.msk [vmem:[%s1276_s8 + $0xd8] sm:$0xff] %vm224_vm1, %v811_v0  ;;  %v725_v7 = vld [vmem:[#allocation2 + $0x60] sm:$0xff] }
 0x105   : > { %v741_v8 = vld [vmem:[#allocation2 + $0xe0] sm:$0xff]  ;;  %825 = vst.msk [vmem:[%s1276_s8 + $0x48] sm:$0xff] %vm224_vm1, %v793_v3  ;;  %v798_v9 = vmax.f32 %v766_v5, 0.0  ;;  %v764_v11 = vadd.f32 %v1264_v50, %v725_v7 }
 0x106   : > { %841 = vst.msk [vmem:[%s1276_s8 + $0xc8] sm:$0xff] %vm224_vm1, %v809_v4  ;;  %v814_v10 = vmax.f32 %v782_v6, 0.0  ;;  %v780_v12 = vadd.f32 %v1264_v50, %v741_v8  ;;  %v728_v13 = vld [vmem:[#allocation2 + $0x78] sm:$0xff] }
 0x107   : > { %v744_v14 = vld [vmem:[#allocation2 + $0xf8] sm:$0xff]  ;;  %830 = vst.msk [vmem:[%s1276_s8 + $0x70] sm:$0xff] %vm224_vm1, %v798_v9  ;;  %v796_v15 = vmax.f32 %v764_v11, 0.0  ;;  %v767_v17 = vadd.f32 %v1264_v50, %v728_v13 }
 0x108   : > { %846 = vst.msk [vmem:[%s1276_s8 + $0xf0] sm:$0xff] %vm224_vm1, %v814_v10  ;;  %v812_v16 = vmax.f32 %v780_v12, 0.0  ;;  %v783_v18 = vadd.f32 %v1264_v50, %v744_v14  ;;  %v726_v19 = vld [vmem:[#allocation2 + $0x68] sm:$0xff] }
 0x109   : > { %v742_v20 = vld [vmem:[#allocation2 + $0xe8] sm:$0xff]  ;;  %828 = vst.msk [vmem:[%s1276_s8 + $0x60] sm:$0xff] %vm224_vm1, %v796_v15  ;;  %v799_v21 = vmax.f32 %v767_v17, 0.0  ;;  %v765_v23 = vadd.f32 %v1264_v50, %v726_v19 }
 0x10a   : > { %844 = vst.msk [vmem:[%s1276_s8 + $0xe0] sm:$0xff] %vm224_vm1, %v812_v16  ;;  %v815_v22 = vmax.f32 %v783_v18, 0.0  ;;  %v781_v24 = vadd.f32 %v1264_v50, %v742_v20 }
 0x10b   : > { %831 = vst.msk [vmem:[%s1276_s8 + $0x78] sm:$0xff] %vm224_vm1, %v799_v21  ;;  %v797_v25 = vmax.f32 %v765_v23, 0.0 }
 0x10c   : > { %847 = vst.msk [vmem:[%s1276_s8 + $0xf8] sm:$0xff] %vm224_vm1, %v815_v22  ;;  %v813_v26 = vmax.f32 %v781_v24, 0.0 }
 0x10d   : > { %829 = vst.msk [vmem:[%s1276_s8 + $0x68] sm:$0xff] %vm224_vm1, %v797_v25 }
 0x10e   : > { %845 = vst.msk [vmem:[%s1276_s8 + $0xe8] sm:$0xff] %vm224_vm1, %v813_v26 }
 0x10f PF: > { %s13_s14 = sadd.s32 1, %s1116_s14   ;;  %s1408_s12 = smov %s1112_s13 }
 0x110   : > { %p10_p5 = scmp.ge.s32.totalorder %s13_s14, 4   ;;  %s1409_s13 = smov %s1411_s15 }
 0x112   :  { %12 = sbr.rel (!%p10_p5) target bundleno = 2 (0x2), region = 73 }

</bundles_post_ra>
